<compile_context>
chip_gen: v6e
topology: v6e:2x2x1
jax: 0.10.0
libtpu: 0.0.40
codegen_flags: <defaults>
</compile_context>

<pallas_src>
import jax
import jax.numpy as jnp
from jax.experimental import pallas as pl
from jax.experimental.pallas import tpu as pltpu


def _copy_kernel(x_ref, o_ref):
    # Pure lane-dense tile copy: (tile_rows, L) -> (tile_rows, L).
    o_ref[...] = x_ref[...]


def expand_temporal_dim(x_seq: jax.Array, T: int) -> jax.Array:
    """x_seq: (T*B, C, H, W) -> (T, B, C, H, W); forward of ExpandTemporalDim."""
    assert x_seq.shape[0] % T == 0, "leading dim must be divisible by T"
    B = x_seq.shape[0] // T
    out_logical_shape = (T, B) + tuple(x_seq.shape[1:])

    total = 1
    for d in x_seq.shape:
        total *= int(d)

    # Pick a lane-dense flat width: the largest multiple of 128 (capped at
    # 4096) that divides the total element count.
    L = None
    for cand in (4096, 2048, 1024, 512, 256, 128):
        if total % cand == 0:
            L = cand
            break
    if L is None:
        # TODO(synk): element count not a multiple of 128 -- the op is a pure
        # metadata view, so fall back to the free XLA reshape (no kernel).
        return jnp.reshape(x_seq, out_logical_shape)

    rows = total // L
    itemsize = jnp.dtype(x_seq.dtype).itemsize

    # Target ~2 MiB per tile: big enough to sit near the HBM roofline
    # (>85% measured for >=512-wide tiles), small enough that the
    # double-buffered 4x footprint (~8 MiB) fits every chip's scoped VMEM.
    target_tile_bytes = 2 * 1024 * 1024
    tile_rows = max(1, target_tile_bytes // (L * itemsize))
    if tile_rows >= rows:
        tile_rows = rows                      # full-extent block: always legal
    else:
        tile_rows = max(8, (tile_rows // 8) * 8)   # keep sublane dim % 8 == 0
        tile_rows = min(tile_rows, rows)

    grid = (pl.cdiv(rows, tile_rows),)

    # Contiguous flatten on both sides is a free metadata reshape in XLA.
    x2d = jnp.reshape(x_seq, (rows, L))

    out2d = pl.pallas_call(
        _copy_kernel,
        out_shape=jax.ShapeDtypeStruct((rows, L), x_seq.dtype),
        grid_spec=pltpu.PrefetchScalarGridSpec(
            num_scalar_prefetch=0,
            grid=grid,
            in_specs=[pl.BlockSpec((tile_rows, L), lambda i: (i, 0))],
            out_specs=pl.BlockSpec((tile_rows, L), lambda i: (i, 0)),
        ),
        compiler_params=pltpu.CompilerParams(
            # Independent tiles: shard across v7x's 2 TensorCores.
            dimension_semantics=("parallel",),
            # Headroom for the double-buffered in/out tiles (4 x ~2 MiB).
            vmem_limit_bytes=32 * 1024 * 1024,
        ),
    )(x2d)

    return jnp.reshape(out2d, out_logical_shape)


if __name__ == "__main__":
    key = jax.random.PRNGKey(0)
    T, B, C, H, W = 4, 2, 4, 16, 16
    # Module input: temporal dim already merged into batch -> (T*B, C, H, W).
    x_seq = jax.random.normal(key, (T * B, C, H, W), dtype=jnp.float32)

    out = expand_temporal_dim(x_seq, T)
    out = jax.block_until_ready(out)

    # Reference: x_seq.view(T, B, C, H, W)
    ref = x_seq.reshape(T, B, C, H, W)
    assert out.shape == (T, B, C, H, W), out.shape
    assert out.dtype == x_seq.dtype
    assert bool(jnp.array_equal(out, ref))

    print("KERNEL_OK")
</pallas_src>

<mosaic_0001>
module attributes {stable_mosaic.version = 11 : i64} {
  func.func @_copy_kernel(%arg0: i32, %arg1: memref<2x4096xf32, #tpu.memory_space<vmem>>, %arg2: memref<2x4096xf32, #tpu.memory_space<vmem>>) attributes {dimension_semantics = [#tpu.dimension_semantics<parallel>], iteration_bounds = array<i64: 1>, scalar_prefetch = 0 : i64, scratch_operands = 0 : i64, tpu.core_type = #tpu.core_type<tc>, window_params = [{transform_indices = @transform_0, window_bounds = array<i64: 2, 4096>}, {transform_indices = @transform_1, window_bounds = array<i64: 2, 4096>}]} {
    %c0 = arith.constant 0 : index
    %c0_0 = arith.constant 0 : index
    %0 = vector.load %arg1[%c0, %c0_0] : memref<2x4096xf32, #tpu.memory_space<vmem>>, vector<2x4096xf32>
    %c0_1 = arith.constant 0 : index
    %c0_2 = arith.constant 0 : index
    %1 = vector.load %arg2[%c0_1, %c0_2] : memref<2x4096xf32, #tpu.memory_space<vmem>>, vector<2x4096xf32>
    tpu.vector_store %arg2[%c0_1, %c0_2], %0 {strides = array<i32>} : memref<2x4096xf32, #tpu.memory_space<vmem>>, vector<2x4096xf32>,
    return
  }
  func.func @transform_0(%arg0: i32) -> (i32, i32) {
    %c0_i32 = arith.constant 0 : i32
    %c0_i32_0 = arith.constant 0 : i32
    return %arg0, %c0_i32 : i32, i32
  }
  func.func @transform_1(%arg0: i32) -> (i32, i32) {
    %c0_i32 = arith.constant 0 : i32
    %c0_i32_0 = arith.constant 0 : i32
    return %arg0, %c0_i32 : i32, i32
  }
}

</mosaic_0001>

<bundles_post_ra>
// kernel: tpu_custom_call.1
= control target key start
LH: loop header
LB: loop body
LE: loop exit
PB: predicated region body
PF: predicated region fallthrough
CT: control target
= control target key end

     0   :  { %6 = vsyncpa [#allocation3], 0  ;;  %s116_s0 = inlined_call_operand.hbm [shape: f32[2,4096], index: 0, kind: input, shape index: {}]   ;;  %s117_s1 = inlined_call_operand.hbm [shape: f32[2,4096], index: 1, kind: output, shape index: {}]  }
   0x1   :  { %7 = vsyncpa [#allocation4], 0  ;;  %s98_s6 = smov [#allocation2]  }
   0x2   :  { %s14_s7 = sshll.u32 %s98_s6, 4  ;;  %s15_s7 = int_to_ptr.vmem [resolvable:$true] %s14_s7 }
   0x3   :  { %s62_s8 = scalar_lea.vmem %s15_s7, 1024  ;;  %p67_p1 = scmp.lt.s32.totalorder %s15_s7, %s15_s7 }
   0x4   :  { %p63_p0 = scmp.ne.s32.totalorder %s15_s7, %s62_s8  ;;  %p68_p2 = scmp.lt.s32.totalorder %s62_s8, %s62_s8 }
   0x6   :  { %p69_p3 = por %p68_p2, %p67_p1 }
   0x8   :  { %p70_p4 = pnand %p69_p3, %p63_p0 }
   0xa   :  { %73 = shalt.err (!%p70_p4)
}
   0xb   :  { %17 = dma.hbm_to_vmem [thread:$0]  %s116_s0, 1024, %s15_s7, [#allocation3]  }
   0xc   :  { %94 = dma.done.wait [#allocation3], 1024  }
   0xd   :  { %95 = vsyncadd [#allocation3], 4294966272  ;;  %s99_s11 = smov [#allocation5]   ;;  %v21_v0 = vld [vmem:[#allocation2] sm:$0xff]  ;;  %v22_v1 = vld [vmem:[#allocation2 + $0x8] sm:$0xff] }
   0xe   :  { %s43_s12 = sshll.u32 %s99_s11, 4  ;;  %v23_v2 = vld [vmem:[#allocation2 + $0x10] sm:$0xff]  ;;  %29 = vst [vmem:[#allocation5] sm:$0xff] %v21_v0  ;;  %30 = vst [vmem:[#allocation5 + $0x8] sm:$0xff] %v22_v1  ;;  %v24_v3 = vld [vmem:[#allocation2 + $0x18] sm:$0xff]  ;;  %s44_s12 = int_to_ptr.vmem [resolvable:$true] %s43_s12 }
   0xf   :  { %31 = vst [vmem:[#allocation5 + $0x10] sm:$0xff] %v23_v2  ;;  %v25_v4 = vld [vmem:[#allocation2 + $0x20] sm:$0xff]  ;;  %v26_v5 = vld [vmem:[#allocation2 + $0x28] sm:$0xff]  ;;  %32 = vst [vmem:[#allocation5 + $0x18] sm:$0xff] %v24_v3  ;;  %s74_s0 = scalar_lea.vmem %s44_s12, 1024  ;;  %p79_p6 = scmp.lt.s32.totalorder %s44_s12, %s44_s12 }
  0x10   :  { %33 = vst [vmem:[#allocation5 + $0x20] sm:$0xff] %v25_v4  ;;  %34 = vst [vmem:[#allocation5 + $0x28] sm:$0xff] %v26_v5  ;;  %v27_v6 = vld [vmem:[#allocation2 + $0x30] sm:$0xff]  ;;  %v28_v7 = vld [vmem:[#allocation2 + $0x38] sm:$0xff]  ;;  %p75_p5 = scmp.ne.s32.totalorder %s44_s12, %s74_s0  ;;  %p80_p7 = scmp.lt.s32.totalorder %s74_s0, %s74_s0 }
  0x11   :  { %35 = vst [vmem:[#allocation5 + $0x30] sm:$0xff] %v27_v6  ;;  %36 = vst [vmem:[#allocation5 + $0x38] sm:$0xff] %v28_v7 }
  0x12   :  { %p81_p8 = por %p80_p7, %p79_p6 }
  0x14   :  { %p82_p9 = pnand %p81_p8, %p75_p5 }
  0x16   :  { %85 = shalt.err (!%p82_p9)
}
  0x17   :  { %46 = dma.vmem_to_hbm [thread:$0]  %s44_s12, 1024, %s117_s1, [#allocation4]  }
  0x18   :  { %96 = dma.done.wait [#allocation4], 1024  }
  0x19   :  { %97 = vsyncadd [#allocation4], 4294966272 }
  0x1a   :  { %50 = vsyncpa [#allocation3], 1 }
  0x1b   :  { %51 = vsyncpa [#allocation4], 1 }

</bundles_post_ra>
